<compile_context>
chip_gen: v5e
topology: v5e:2x2
jax: 0.10.0
libtpu: 0.0.40
codegen_flags: <defaults>
</compile_context>

<pallas_src>
import jax
import jax.numpy as jnp
import numpy as np
from jax.experimental import pallas as pl
from jax.experimental.pallas import tpu as pltpu

_HIDDEN = 64


def _round_up(x, m):
    return ((x + m - 1) // m) * m


def _cdiv(a, b):
    return -(-a // b)


def _critic_kernel(x_ref, w1_ref, b1_ref, w2_ref, b2_ref, w3_ref, b3_ref, v_ref):
    x = x_ref[...]                                                    # (TB, S)
    h1 = jnp.tanh(
        jnp.dot(x, w1_ref[...], preferred_element_type=jnp.float32) + b1_ref[...]
    )                                                                 # (TB, 64)
    h2 = jnp.tanh(
        jnp.dot(h1, w2_ref[...], preferred_element_type=jnp.float32) + b2_ref[...]
    )                                                                 # (TB, 64)
    # fc3 has a single output feature. Computing it as an M=1 "NT" matmul
    # (w3 @ h2^T) yields the value directly as a lane-dense (1, TB) row: the
    # store is a full-lane vst and the writeback DMA is one contiguous
    # 4*TB-byte transfer (vs. TB 4-byte granules for a (TB, 1) column). The
    # MXU is nearly idle in this kernel, so the extra M=1 pass is free.
    v = jax.lax.dot_general(
        w3_ref[...], h2,
        dimension_numbers=(((1,), (1,)), ((), ())),
        preferred_element_type=jnp.float32,
    ) + b3_ref[...]                                                   # (1, TB)
    v_ref[...] = v.astype(v_ref.dtype)


def critic_forward(x, params, *, block_b=2048):
    """x: (B, state_size) float32 -> (B, 1) float32."""
    w1, b1, w2, b2, w3, b3 = params
    B, S = x.shape
    H = w1.shape[1]

    # ---- Batch tiling -------------------------------------------------------
    # Balance the tile across the grid (padding waste < 8 rows per tile) and
    # prefer >= 2 tiles so both v7x TensorCores get work on the parallel axis.
    target = max(8, _round_up(block_b, 8))
    n_tiles = max(_cdiv(B, target), 1)
    if n_tiles == 1 and B >= 16:
        n_tiles = 2
    TB = _round_up(_cdiv(B, n_tiles), 8)
    Bp = TB * n_tiles
    if Bp != B:
        x = jnp.pad(x, ((0, Bp - B), (0, 0)))     # padded rows sliced off below
    grid = (n_tiles,)

    # ---- VMEM budget: ~4x the real footprint, clamped to [16, 32] MiB -------
    itemsize = 4
    x_buf = 2 * TB * S * itemsize                 # double-buffered input tile
    out_buf = 2 * 8 * TB * itemsize               # (1, TB) block, 8-sublane pad
    act_buf = 2 * TB * H * itemsize               # h1/h2 f32 intermediates
    wt_buf = (S * H + H + H * H + H + H + 1) * itemsize
    vmem_limit = int(min(max(4 * (x_buf + out_buf + act_buf + wt_buf),
                             16 * 1024 * 1024),
                         32 * 1024 * 1024))

    cost = pl.CostEstimate(
        flops=2 * Bp * (S * H + H * H + H),
        transcendentals=2 * Bp * H,
        bytes_accessed=itemsize * (Bp * S + Bp + S * H + H * H + 3 * H + 1),
    )

    # Weights/biases: constant index_map -> DMA'd once, VMEM-resident for all
    # batch tiles.
    const = lambda a: pl.BlockSpec(a.shape, lambda i: (0,) * a.ndim)

    out = pl.pallas_call(
        _critic_kernel,
        out_shape=jax.ShapeDtypeStruct((n_tiles, 1, TB), jnp.float32),
        grid=grid,
        in_specs=[
            pl.BlockSpec((TB, S), lambda i: (i, 0)),    # streamed batch tile
            const(w1), const(b1),
            const(w2), const(b2),
            const(w3), const(b3),
        ],
        # Lane-dense output: one contiguous (1, TB) row per grid step.
        out_specs=pl.BlockSpec((None, 1, TB), lambda i: (i, 0, 0)),
        compiler_params=pltpu.CompilerParams(
            dimension_semantics=("parallel",),          # megacore split on v7x
            vmem_limit_bytes=vmem_limit,
        ),
        cost_estimate=cost,
    )(x, w1, b1, w2, b2, w3, b3)

    return out.reshape(Bp, 1)[:B]


def init_critic_params(key, state_size, hidden=_HIDDEN):
    """Deterministic init mirroring torch.nn.Linear defaults:
    U(-1/sqrt(fan_in), 1/sqrt(fan_in)); then fc3.weight *= 0.1, fc3.bias *= 0."""
    k1, k2, k3, k4, k5, k6 = jax.random.split(key, 6)

    def lin_t(kw, kb, fan_in, fan_out):
        bound = 1.0 / np.sqrt(fan_in)
        w = jax.random.uniform(kw, (fan_in, fan_out), jnp.float32, -bound, bound)
        b = jax.random.uniform(kb, (1, fan_out), jnp.float32, -bound, bound)
        return w, b

    w1, b1 = lin_t(k1, k2, state_size, hidden)
    w2, b2 = lin_t(k3, k4, hidden, hidden)
    bound3 = 1.0 / np.sqrt(hidden)
    # fc3 stored as a (1, hidden) row == torch weight layout (out=1, in=hidden).
    w3 = jax.random.uniform(k5, (1, hidden), jnp.float32, -bound3, bound3) * 0.1
    b3 = jax.random.uniform(k6, (1, 1), jnp.float32, -bound3, bound3) * 0.0
    return (w1, b1, w2, b2, w3, b3)


def critic_reference(x, params):
    """Pure-JAX reference for correctness checking."""
    w1, b1, w2, b2, w3, b3 = params
    h1 = jnp.tanh(x @ w1 + b1)
    h2 = jnp.tanh(h1 @ w2 + b2)
    return h2 @ w3.T + b3


if __name__ == "__main__":
    key = jax.random.PRNGKey(0)
    k_param, k_x1, k_x2 = jax.random.split(key, 3)

    state_size = 32
    params = init_critic_params(k_param, state_size)

    # Small batch (single tile path, TB == B == 8).
    x_small = jax.random.normal(k_x1, (8, state_size), jnp.float32)
    v_small = jax.block_until_ready(critic_forward(x_small, params))
    assert v_small.shape == (8, 1)
    np.testing.assert_allclose(
        np.asarray(v_small), np.asarray(critic_reference(x_small, params)),
        rtol=1e-5, atol=1e-5)

    # Multi-tile batch, balanced tiles (block_b=256 -> 3 tiles of 200, no pad).
    x_big = jax.random.normal(k_x2, (600, state_size), jnp.float32)
    v_big = jax.block_until_ready(critic_forward(x_big, params, block_b=256))
    assert v_big.shape == (600, 1)
    np.testing.assert_allclose(
        np.asarray(v_big), np.asarray(critic_reference(x_big, params)),
        rtol=1e-5, atol=1e-5)

    # Default block_b: exercises the forced 2-tile split + ragged-tail padding.
    v_big2 = jax.block_until_ready(critic_forward(x_big, params))
    assert v_big2.shape == (600, 1)
    np.testing.assert_allclose(
        np.asarray(v_big2), np.asarray(critic_reference(x_big, params)),
        rtol=1e-5, atol=1e-5)

    print("KERNEL_OK")
</pallas_src>

<mosaic_0001>
module attributes {stable_mosaic.version = 11 : i64} {
  func.func @_critic_kernel(%arg0: i32, %arg1: memref<8x32xf32, #tpu.memory_space<vmem>>, %arg2: memref<32x64xf32, #tpu.memory_space<vmem>>, %arg3: memref<1x64xf32, #tpu.memory_space<vmem>>, %arg4: memref<64x64xf32, #tpu.memory_space<vmem>>, %arg5: memref<1x64xf32, #tpu.memory_space<vmem>>, %arg6: memref<1x64xf32, #tpu.memory_space<vmem>>, %arg7: memref<1x1xf32, #tpu.memory_space<vmem>>, %arg8: memref<1x1x8xf32, #tpu.memory_space<vmem>>) attributes {dimension_semantics = [#tpu.dimension_semantics<parallel>], iteration_bounds = array<i64: 1>, scalar_prefetch = 0 : i64, scratch_operands = 0 : i64, tpu.core_type = #tpu.core_type<tc>, window_params = [{transform_indices = @transform_0, window_bounds = array<i64: 8, 32>}, {pipeline_mode = #tpu.pipeline_mode<synchronous>, transform_indices = @transform_1, window_bounds = array<i64: 32, 64>}, {pipeline_mode = #tpu.pipeline_mode<synchronous>, transform_indices = @transform_2, window_bounds = array<i64: 1, 64>}, {pipeline_mode = #tpu.pipeline_mode<synchronous>, transform_indices = @transform_3, window_bounds = array<i64: 64, 64>}, {pipeline_mode = #tpu.pipeline_mode<synchronous>, transform_indices = @transform_4, window_bounds = array<i64: 1, 64>}, {pipeline_mode = #tpu.pipeline_mode<synchronous>, transform_indices = @transform_5, window_bounds = array<i64: 1, 64>}, {pipeline_mode = #tpu.pipeline_mode<synchronous>, transform_indices = @transform_6, window_bounds = array<i64: 1, 1>}, {transform_indices = @transform_7, window_bounds = array<i64: 1, 1, 8>}]} {
    %c0 = arith.constant 0 : index
    %c0_0 = arith.constant 0 : index
    %0 = vector.load %arg1[%c0, %c0_0] : memref<8x32xf32, #tpu.memory_space<vmem>>, vector<8x32xf32>
    %c0_1 = arith.constant 0 : index
    %c0_2 = arith.constant 0 : index
    %1 = vector.load %arg2[%c0_1, %c0_2] : memref<32x64xf32, #tpu.memory_space<vmem>>, vector<32x64xf32>
    %cst = arith.constant dense<0.000000e+00> : vector<8x64xf32>
    %2 = tpu.matmul %0, %1, %cst {dimension_numbers = #tpu.dot_dimension_numbers<[1], [0], [0], [1], [0, 0, 1, 1], [], []>} : vector<8x32xf32>, vector<32x64xf32>, vector<8x64xf32> -> vector<8x64xf32>
    %c0_3 = arith.constant 0 : index
    %c0_4 = arith.constant 0 : index
    %3 = vector.load %arg3[%c0_3, %c0_4] : memref<1x64xf32, #tpu.memory_space<vmem>>, vector<1x64xf32>
    %4 = vector.broadcast %3 : vector<1x64xf32> to vector<8x64xf32>
    %5 = arith.addf %2, %4 : vector<8x64xf32>
    %6 = math.tanh %5 : vector<8x64xf32>
    %c0_5 = arith.constant 0 : index
    %c0_6 = arith.constant 0 : index
    %7 = vector.load %arg4[%c0_5, %c0_6] : memref<64x64xf32, #tpu.memory_space<vmem>>, vector<64x64xf32>
    %cst_7 = arith.constant dense<0.000000e+00> : vector<8x64xf32>
    %8 = tpu.matmul %6, %7, %cst_7 {dimension_numbers = #tpu.dot_dimension_numbers<[1], [0], [0], [1], [0, 0, 1, 1], [], []>} : vector<8x64xf32>, vector<64x64xf32>, vector<8x64xf32> -> vector<8x64xf32>
    %c0_8 = arith.constant 0 : index
    %c0_9 = arith.constant 0 : index
    %9 = vector.load %arg5[%c0_8, %c0_9] : memref<1x64xf32, #tpu.memory_space<vmem>>, vector<1x64xf32>
    %10 = vector.broadcast %9 : vector<1x64xf32> to vector<8x64xf32>
    %11 = arith.addf %8, %10 : vector<8x64xf32>
    %12 = math.tanh %11 : vector<8x64xf32>
    %c0_10 = arith.constant 0 : index
    %c0_11 = arith.constant 0 : index
    %13 = vector.load %arg6[%c0_10, %c0_11] : memref<1x64xf32, #tpu.memory_space<vmem>>, vector<1x64xf32>
    %cst_12 = arith.constant dense<0.000000e+00> : vector<1x8xf32>
    %14 = tpu.matmul %13, %12, %cst_12 {dimension_numbers = #tpu.dot_dimension_numbers<[1], [1], [0], [0], [0, 0, 1, 0], [], []>} : vector<1x64xf32>, vector<8x64xf32>, vector<1x8xf32> -> vector<1x8xf32>
    %c0_13 = arith.constant 0 : index
    %c0_14 = arith.constant 0 : index
    %15 = vector.load %arg7[%c0_13, %c0_14] : memref<1x1xf32, #tpu.memory_space<vmem>>, vector<1x1xf32>
    %16 = vector.broadcast %15 : vector<1x1xf32> to vector<1x8xf32>
    %17 = arith.addf %14, %16 : vector<1x8xf32>
    %c0_15 = arith.constant 0 : index
    %c0_16 = arith.constant 0 : index
    %c0_17 = arith.constant 0 : index
    %18 = vector.load %arg8[%c0_15, %c0_16, %c0_17] : memref<1x1x8xf32, #tpu.memory_space<vmem>>, vector<1x1x8xf32>
    %19 = vector.shape_cast %18 : vector<1x1x8xf32> to vector<1x8xf32>
    %20 = vector.shape_cast %17 : vector<1x8xf32> to vector<1x1x8xf32>
    tpu.vector_store %arg8[%c0_15, %c0_16, %c0_17], %20 {strides = array<i32>} : memref<1x1x8xf32, #tpu.memory_space<vmem>>, vector<1x1x8xf32>,
    return
  }
  func.func @transform_0(%arg0: i32) -> (i32, i32) {
    %c0_i32 = arith.constant 0 : i32
    %c0_i32_0 = arith.constant 0 : i32
    return %arg0, %c0_i32 : i32, i32
  }
  func.func @transform_1(%arg0: i32) -> (i32, i32) {
    %c0_i32 = arith.constant 0 : i32
    %c0_i32_0 = arith.constant 0 : i32
    %c0_i32_1 = arith.constant 0 : i32
    return %c0_i32, %c0_i32_0 : i32, i32
  }
  func.func @transform_2(%arg0: i32) -> (i32, i32) {
    %c0_i32 = arith.constant 0 : i32
    %c0_i32_0 = arith.constant 0 : i32
    %c0_i32_1 = arith.constant 0 : i32
    return %c0_i32, %c0_i32_0 : i32, i32
  }
  func.func @transform_3(%arg0: i32) -> (i32, i32) {
    %c0_i32 = arith.constant 0 : i32
    %c0_i32_0 = arith.constant 0 : i32
    %c0_i32_1 = arith.constant 0 : i32
    return %c0_i32, %c0_i32_0 : i32, i32
  }
  func.func @transform_4(%arg0: i32) -> (i32, i32) {
    %c0_i32 = arith.constant 0 : i32
    %c0_i32_0 = arith.constant 0 : i32
    %c0_i32_1 = arith.constant 0 : i32
    return %c0_i32, %c0_i32_0 : i32, i32
  }
  func.func @transform_5(%arg0: i32) -> (i32, i32) {
    %c0_i32 = arith.constant 0 : i32
    %c0_i32_0 = arith.constant 0 : i32
    %c0_i32_1 = arith.constant 0 : i32
    return %c0_i32, %c0_i32_0 : i32, i32
  }
  func.func @transform_6(%arg0: i32) -> (i32, i32) {
    %c0_i32 = arith.constant 0 : i32
    %c0_i32_0 = arith.constant 0 : i32
    %c0_i32_1 = arith.constant 0 : i32
    return %c0_i32, %c0_i32_0 : i32, i32
  }
  func.func @transform_7(%arg0: i32) -> (i32, i32, i32) {
    %c0_i32 = arith.constant 0 : i32
    %c0_i32_0 = arith.constant 0 : i32
    %c0_i32_1 = arith.constant 0 : i32
    return %arg0, %c0_i32, %c0_i32_0 : i32, i32, i32
  }
}

</mosaic_0001>

<bundles_post_ra>
// kernel: tpu_custom_call.1
= control target key start
LH: loop header
LB: loop body
LE: loop exit
PB: predicated region body
PF: predicated region fallthrough
CT: control target
= control target key end

     0   :  { %s390_s0 = inlined_call_operand.hbm [shape: f32[8,32], index: 0, kind: input, shape index: {}]   ;;  %s391_s1 = inlined_call_operand.hbm [shape: f32[32,64], index: 1, kind: input, shape index: {}]   ;;  %s392_s2 = inlined_call_operand.vmem [shape: f32[1,64], index: 2, kind: input, shape index: {}]   ;;  %s393_s3 = inlined_call_operand.hbm [shape: f32[64,64], index: 3, kind: input, shape index: {}]   ;;  %s394_s4 = inlined_call_operand.vmem [shape: f32[1,64], index: 4, kind: input, shape index: {}]   ;;  %s395_s5 = inlined_call_operand.vmem [shape: f32[1,64], index: 5, kind: input, shape index: {}]   ;;  %s396_s6 = inlined_call_operand.<no memory space> [shape: f32[1,1], index: 6, kind: input, shape index: {}]   ;;  %s397_s7 = inlined_call_operand.hbm [shape: f32[1,1,8], index: 7, kind: output, shape index: {}]  }
   0x1   :  { %v12_v0 = vstv %s396_s6 }
   0x2   :  { %13 = vst [vmem:[#allocation2] sm:$0x1] %v12_v0 }
   0x3   :  { %14 = vsyncpa [#allocation4], 0 }
   0x4   :  { %15 = vsyncpa [#allocation7], 0  ;;  %s32_s28 = sshll.u32 %s391_s1, 4  ;;  %s33_s28 = int_to_ptr.hbm [resolvable:$true] %s32_s28 }
   0x5   :  { %16 = vsyncpa [#allocation5], 0  ;;  %s319_s29 = smov [#allocation6]   ;;  %s22_s10 = sshll.u32 %s390_s0, 4  ;;  %s23_s10 = int_to_ptr.hbm [resolvable:$true] %s22_s10 }
   0x6   :  { %s34_s30 = sshll.u32 %s319_s29, 4  ;;  %s320_s11 = smov 128   ;;  %s35_s30 = int_to_ptr.vmem [resolvable:$true] %s34_s30 }
   0x7   :  { %s321_s12 = smov 8   ;;  %s322_s6 = smov [#allocation3]  }
   0x8   :  { %40 = dma.hbm_to_vmem [thread:$0]  %s33_s28, 512, %s35_s30, [#allocation7], %s320_s11, %s320_s11, %s321_s12  }
   0x9   :  { %s24_s13 = sshll.u32 %s322_s6, 4  ;;  %s47_s16 = sshll.u32 %s393_s3, 4  ;;  %s25_s13 = int_to_ptr.vmem [resolvable:$true] %s24_s13  ;;  %s48_s16 = int_to_ptr.hbm [resolvable:$true] %s47_s16 }
   0xa   :  { %27 = dma.hbm_to_vmem [thread:$0]  %s23_s10, 128, %s25_s13, [#allocation4]  }
   0xb   :  { %s323_s1 = smov [#allocation8]  }
   0xc   :  { %s49_s17 = sshll.u32 %s323_s1, 4  ;;  %s50_s17 = int_to_ptr.vmem [resolvable:$true] %s49_s17 }
   0xd   :  { %55 = dma.hbm_to_vmem [thread:$0]  %s48_s16, 1024, %s50_s17, [#allocation7], %s320_s11, %s320_s11, %s321_s12  }
   0xe   :  { %313 = dma.done.wait [#allocation4], 128  }
   0xf   :  { %314 = vsyncadd [#allocation4], 4294967168 }
  0x10   :  { %315 = dma.done.wait [#allocation7], 1536  }
  0x11   :  { %316 = vsyncadd [#allocation7], 4294965760  ;;  %v78_v1 = vld [vmem:[#allocation6 + $0x18] sm:$0xff]  ;;  %v77_v2 = vld [vmem:[#allocation6 + $0x10] sm:$0xff]  ;;  %vm83_vm0 = vcmask 261120   ;;  %vm120_vm1 = vcmask 523264  }
  0x12   :  { %99 = vmatpush.msra.mxu0 %v78_v1  ;;  %v115_v3 = vld [vmem:[#allocation8 + $0x38] sm:$0xff]  ;;  %v76_v4 = vld [vmem:[#allocation6 + $0x8] sm:$0xff]  ;;  %v114_v5 = vld [vmem:[#allocation8 + $0x30] sm:$0xff]  ;;  %v324_v19 = vmov 0   ;;  %s325_s21 = smov [#allocation9]   ;;  %s188_s25 = sshll.u32 %s397_s7, 4  ;;  %s189_s25 = int_to_ptr.hbm [resolvable:$true] %s188_s25 }
  0x13   :  { %132 = vmatpush.msra.mxu1 %v115_v3  ;;  %v113_v6 = vld [vmem:[#allocation8 + $0x28] sm:$0xff]  ;;  %v75_v7 = vld [vmem:[#allocation6] sm:$0xff]  ;;  %v74_v8 = vld [vmem:[#allocation3] sm:$0xff]  ;;  %210 = vset.pattern.permute.xlu0 %v324_v19  ;;  %s186_s22 = sshll.u32 %s325_s21, 4  ;;  %vm179_vm2 = vcmask 57344   ;;  %s187_s22 = int_to_ptr.vmem [resolvable:$true] %s186_s22 }
  0x14   :  { %100 = vmatpush.msra.mxu0 %v77_v2  ;;  %v112_v9 = vld [vmem:[#allocation8 + $0x20] sm:$0xff]  ;;  %v111_v10 = vld [vmem:[#allocation8 + $0x18] sm:$0xff]  ;;  %v110_v11 = vld [vmem:[#allocation8 + $0x10] sm:$0xff] }
  0x15   :  { %133 = vmatpush.msra.mxu1 %v114_v5  ;;  %v109_v12 = vld [vmem:[#allocation8 + $0x8] sm:$0xff]  ;;  %v108_v13 = vld [vmem:[#allocation8] sm:$0xff]  ;;  %v211_v14 = vld [vmem:[%s392_s2] ss:$0 sm:$0xff] }
  0x16   :  { %101 = vmatpush.msra.mxu0 %v76_v4  ;;  %v146_v18 = vld [vmem:[#allocation2] sm:$0x1] }
  0x17   :  { %134 = vmatpush.msra.mxu1 %v113_v6  ;;  %149 = vperm.xlu0 %210, %v146_v18   ;;  %v212_v20 = vld [vmem:[%s394_s4] ss:$0 sm:$0xff] }
  0x18   :  { %102 = vmatpush.msra.mxu0 %v75_v7  ;;  %v145_v24 = vld [vmem:[%s395_s5] sm:$0x1] }
  0x19   :  { %199 = vmatmul.msk.f32.vlgmr.msra.gmra.mxu0 %vm83_vm0, %v74_v8  ;;  %135 = vmatpush.msra.mxu1 %v112_v9 }
  0x1b   :  { %136 = vmatpush.msra.mxu1 %v111_v10 }
  0x1d   :  { %137 = vmatpush.msra.mxu1 %v110_v11 }
  0x1f   :  { %138 = vmatpush.msra.mxu1 %v109_v12 }
  0x21   :  { %139 = vmatpush.msra.mxu1 %v108_v13 }
  0x89   :  { %v150_v25 = vpop.permute.xlu0 %149 }
  0x8a   :  { %v152_v26 = vperm.slane %v150_v25, 0 }
  0x96   :  { %v104_v15 = vpop.f32.mrf.mxu0 }
  0x97   :  { %v105_v16 = vadd.f32 %v211_v14, %v104_v15 }
  0x99   :  { %213 = vtanh.f32 %v105_v16 }
  0x9f   :  { %v214_v17 = vpop.eup %213 }
  0xa0   :  { %200 = vmatmul.msk.f32.vlgmr.msra.gmra.mxu1 %vm120_vm1, %v214_v17 }
 0x11d   :  { %v141_v21 = vpop.f32.mrf.mxu1 }
 0x11e   :  { %v142_v22 = vadd.f32 %v212_v20, %v141_v21 }
 0x120   :  { %215 = vtanh.f32 %v142_v22 }
 0x126   :  { %v216_v23 = vpop.eup %215 }
 0x127   :  { %201 = vmatpush.xpose.msk.msra.mxu2 %vm120_vm1, %v216_v23 }
 0x12a   :  { %202 = vmatmul.msk.f32.vlgmr.msra.gmra.mxu2 %vm120_vm1, %v145_v24 }
 0x1ad   :  { %v176_v27 = vpop.f32.mrf.mxu2 }
 0x1ae   :  { %v177_v28 = vadd.f32 %v176_v27, %v152_v26 }
 0x1b0   :  { %180 = vst.msk [vmem:[#allocation9] sm:$0x1] %vm179_vm2, %v177_v28 }
 0x1b1   :  { %191 = dma.vmem_to_hbm [thread:$0]  %s187_s22, 16, %s189_s25, [#allocation5]  }
 0x1b2   :  { %317 = dma.done.wait [#allocation5], 16  }
 0x1b3   :  { %318 = vsyncadd [#allocation5], 4294967280 }
 0x1b4   :  { %196 = vsyncpa [#allocation4], 1 }
 0x1b5   :  { %197 = vsyncpa [#allocation7], 1 }
 0x1b6   :  { %198 = vsyncpa [#allocation5], 1 }

</bundles_post_ra>
